<compile_context>
chip_gen: v7x
topology: tpu7x:2x2x1
jax: 0.10.0
libtpu: 0.0.40
codegen_flags: <defaults>
</compile_context>

<pallas_src>
import jax
import jax.numpy as jnp
from jax.experimental import pallas as pl
from jax.experimental.pallas import tpu as pltpu


def _msi_kernel(x_ref, w1t_ref, b1_ref, w2t_ref, b2_ref, o_ref):
    # x_ref:   (C, t_hw)  f32      channels on sublanes, spatial on lanes
    # w1t_ref: (hidden, C)  bf16   b1_ref: (hidden, 1) f32
    # w2t_ref: (c_out, hidden) bf16  b2_ref: (c_out, 1) f32
    # o_ref:   (c_out, t_hw) f32
    x_bf = x_ref[...].astype(jnp.bfloat16)
    # conv1 (1x1): MXU matmul, bf16 operands, f32 accumulation.
    h = jnp.dot(w1t_ref[...], x_bf, preferred_element_type=jnp.float32)
    h = jnp.maximum(h + b1_ref[...], 0.0)          # bias + ReLU in f32 (VPU)
    # conv2 (1x1): bf16 operands, f32 accumulation.
    y = jnp.dot(w2t_ref[...], h.astype(jnp.bfloat16),
                preferred_element_type=jnp.float32)
    y = jnp.maximum(y + b2_ref[...], 0.0)          # bias + ReLU in f32
    o_ref[...] = y.astype(o_ref.dtype)


def msi_embedder2(x_nchw, w1, b1, w2, b2, *, t_hw_max=32768):
    """Fused 1x1-conv MLP over channels (NCHW in, NCHW out).

    x_nchw: (N, C_in, H, W) float32
    w1: (C_in, 64), b1: (64,), w2: (64, 3), b2: (3,)
    returns: (N, 3, H, W) float32
    """
    N, C, H, W = x_nchw.shape
    hidden = w1.shape[1]
    c_out = w2.shape[1]
    HW = H * W

    # NCHW -> (N, C, H*W): pure reshape, no data movement / transpose.
    x3d = x_nchw.reshape(N, C, HW)

    # Tiny weight reorientations + bf16 cast for the MXU (negligible cost).
    w1t = jnp.transpose(w1).astype(jnp.bfloat16)   # (hidden, C)
    w2t = jnp.transpose(w2).astype(jnp.bfloat16)   # (c_out, hidden)
    b1c = b1.reshape(hidden, 1).astype(jnp.float32)
    b2c = b2.reshape(c_out, 1).astype(jnp.float32)

    # Spatial tile: as large as practical.  If HW fits in one tile, take the
    # full extent (always layout-legal); otherwise a multiple of 128 so lane
    # stores stay unmasked.  Ragged final tiles are safe: every output column
    # depends only on its own input column, so garbage OOB reads never reach
    # real outputs and OOB writes are dropped.
    if HW <= t_hw_max:
        t_hw = HW
    else:
        t_hw = max(128, (t_hw_max // 128) * 128)
    n_hw = pl.cdiv(HW, t_hw)

    # v7x has 2 TensorCores: make sure there are >= 2 grid steps to shard.
    if N * n_hw < 2 and HW >= 256:
        half = pl.cdiv(HW, 2)
        t_hw = ((half + 127) // 128) * 128          # 128-multiple tile
        n_hw = pl.cdiv(HW, t_hw)

    cost = pl.CostEstimate(
        flops=2 * N * HW * (C * hidden + hidden * c_out),
        transcendentals=0,
        bytes_accessed=4 * N * HW * (C + c_out),
    )

    out3d = pl.pallas_call(
        _msi_kernel,
        out_shape=jax.ShapeDtypeStruct((N, c_out, HW), x_nchw.dtype),
        grid_spec=pltpu.PrefetchScalarGridSpec(
            num_scalar_prefetch=0,
            grid=(N, n_hw),
            in_specs=[
                # x tile: batch squeezed, kernel sees (C, t_hw).
                pl.BlockSpec((pl.Squeezed(), C, t_hw), lambda n, j: (n, 0, j)),
                # Weights / biases: constant block index -> resident in VMEM.
                pl.BlockSpec((hidden, C), lambda n, j: (0, 0)),
                pl.BlockSpec((hidden, 1), lambda n, j: (0, 0)),
                pl.BlockSpec((c_out, hidden), lambda n, j: (0, 0)),
                pl.BlockSpec((c_out, 1), lambda n, j: (0, 0)),
            ],
            # Lane-dense output tile (c_out on sublanes, spatial on lanes).
            out_specs=pl.BlockSpec((pl.Squeezed(), c_out, t_hw),
                                   lambda n, j: (n, 0, j)),
        ),
        compiler_params=pltpu.CompilerParams(
            dimension_semantics=("parallel", "parallel")),
        cost_estimate=cost,
    )(x3d, w1t, b1c, w2t, b2c)

    # (N, 3, H*W) -> (N, 3, H, W): pure reshape, no transpose.
    return out3d.reshape(N, c_out, H, W)


def _reference(x_nchw, w1, b1, w2, b2):
    # Pure-JAX f32 reference of the same math (for sanity check).
    x = jnp.transpose(x_nchw, (0, 2, 3, 1))            # NHWC
    h = jnp.maximum(x @ w1 + b1, 0.0)
    y = jnp.maximum(h @ w2 + b2, 0.0)
    return jnp.transpose(y, (0, 3, 1, 2))


if __name__ == "__main__":
    key = jax.random.PRNGKey(0)
    N, C_in, H, W = 2, 4, 16, 16
    hidden, c_out = 64, 3

    k_x, k_w1, k_b1, k_w2, k_b2 = jax.random.split(key, 5)
    x = jax.random.normal(k_x, (N, C_in, H, W), dtype=jnp.float32)

    # Conv2d weight (out, in, 1, 1) represented directly as (in, out) matmul weights.
    w1 = jax.random.normal(k_w1, (C_in, hidden), dtype=jnp.float32) * 0.1
    b1 = jax.random.normal(k_b1, (hidden,), dtype=jnp.float32) * 0.1
    w2 = jax.random.normal(k_w2, (hidden, c_out), dtype=jnp.float32) * 0.1
    b2 = jax.random.normal(k_b2, (c_out,), dtype=jnp.float32) * 0.1

    y = msi_embedder2(x, w1, b1, w2, b2)
    y = jax.block_until_ready(y)

    y_ref = _reference(x, w1, b1, w2, b2)
    assert y.shape == (N, c_out, H, W), y.shape
    # bf16 matmul operands -> relaxed tolerance vs. the f32 reference.
    assert jnp.allclose(y, y_ref, atol=2e-2, rtol=2e-2), \
        float(jnp.max(jnp.abs(y - y_ref)))

    print("KERNEL_OK")
</pallas_src>

<mosaic_0001>
module attributes {stable_mosaic.version = 11 : i64} {
  func.func @_msi_kernel(%arg0: i32, %arg1: i32, %arg2: memref<1x4x256xf32, #tpu.memory_space<vmem>>, %arg3: memref<64x4xbf16, #tpu.memory_space<vmem>>, %arg4: memref<64x1xf32, #tpu.memory_space<vmem>>, %arg5: memref<3x64xbf16, #tpu.memory_space<vmem>>, %arg6: memref<3x1xf32, #tpu.memory_space<vmem>>, %arg7: memref<1x3x256xf32, #tpu.memory_space<vmem>>) attributes {dimension_semantics = [#tpu.dimension_semantics<parallel>, #tpu.dimension_semantics<parallel>], iteration_bounds = array<i64: 2, 1>, scalar_prefetch = 0 : i64, scratch_operands = 0 : i64, tpu.core_type = #tpu.core_type<tc>, window_params = [{transform_indices = @transform_0, window_bounds = array<i64: 1, 4, 256>}, {pipeline_mode = #tpu.pipeline_mode<synchronous>, transform_indices = @transform_1, window_bounds = array<i64: 64, 4>}, {pipeline_mode = #tpu.pipeline_mode<synchronous>, transform_indices = @transform_2, window_bounds = array<i64: 64, 1>}, {pipeline_mode = #tpu.pipeline_mode<synchronous>, transform_indices = @transform_3, window_bounds = array<i64: 3, 64>}, {pipeline_mode = #tpu.pipeline_mode<synchronous>, transform_indices = @transform_4, window_bounds = array<i64: 3, 1>}, {transform_indices = @transform_5, window_bounds = array<i64: 1, 3, 256>}]} {
    %c0 = arith.constant 0 : index
    %c0_0 = arith.constant 0 : index
    %c0_1 = arith.constant 0 : index
    %0 = vector.load %arg2[%c0, %c0_0, %c0_1] : memref<1x4x256xf32, #tpu.memory_space<vmem>>, vector<1x4x256xf32>
    %1 = vector.shape_cast %0 : vector<1x4x256xf32> to vector<4x256xf32>
    %2 = arith.truncf %1 : vector<4x256xf32> to vector<4x256xbf16>
    %c0_2 = arith.constant 0 : index
    %c0_3 = arith.constant 0 : index
    %3 = vector.load %arg3[%c0_2, %c0_3] : memref<64x4xbf16, #tpu.memory_space<vmem>>, vector<64x4xbf16>
    %cst = arith.constant dense<0.000000e+00> : vector<64x256xf32>
    %4 = tpu.matmul %3, %2, %cst {dimension_numbers = #tpu.dot_dimension_numbers<[1], [0], [0], [1], [0, 0, 1, 1], [], []>} : vector<64x4xbf16>, vector<4x256xbf16>, vector<64x256xf32> -> vector<64x256xf32>
    %c0_4 = arith.constant 0 : index
    %c0_5 = arith.constant 0 : index
    %5 = vector.load %arg4[%c0_4, %c0_5] : memref<64x1xf32, #tpu.memory_space<vmem>>, vector<64x1xf32>
    %6 = vector.broadcast %5 : vector<64x1xf32> to vector<64x256xf32>
    %7 = arith.addf %4, %6 : vector<64x256xf32>
    %cst_6 = arith.constant 0.000000e+00 : f32
    %8 = vector.broadcast %cst_6 : f32 to vector<64x256xf32>
    %9 = arith.maximumf %7, %8 : vector<64x256xf32>
    %c0_7 = arith.constant 0 : index
    %c0_8 = arith.constant 0 : index
    %10 = vector.load %arg5[%c0_7, %c0_8] : memref<3x64xbf16, #tpu.memory_space<vmem>>, vector<3x64xbf16>
    %11 = arith.truncf %9 : vector<64x256xf32> to vector<64x256xbf16>
    %cst_9 = arith.constant dense<0.000000e+00> : vector<3x256xf32>
    %12 = tpu.matmul %10, %11, %cst_9 {dimension_numbers = #tpu.dot_dimension_numbers<[1], [0], [0], [1], [0, 0, 1, 1], [], []>} : vector<3x64xbf16>, vector<64x256xbf16>, vector<3x256xf32> -> vector<3x256xf32>
    %c0_10 = arith.constant 0 : index
    %c0_11 = arith.constant 0 : index
    %13 = vector.load %arg6[%c0_10, %c0_11] : memref<3x1xf32, #tpu.memory_space<vmem>>, vector<3x1xf32>
    %14 = vector.broadcast %13 : vector<3x1xf32> to vector<3x256xf32>
    %15 = arith.addf %12, %14 : vector<3x256xf32>
    %cst_12 = arith.constant 0.000000e+00 : f32
    %16 = vector.broadcast %cst_12 : f32 to vector<3x256xf32>
    %17 = arith.maximumf %15, %16 : vector<3x256xf32>
    %c0_13 = arith.constant 0 : index
    %c0_14 = arith.constant 0 : index
    %c0_15 = arith.constant 0 : index
    %18 = vector.load %arg7[%c0_13, %c0_14, %c0_15] : memref<1x3x256xf32, #tpu.memory_space<vmem>>, vector<1x3x256xf32>
    %19 = vector.shape_cast %18 : vector<1x3x256xf32> to vector<3x256xf32>
    %20 = vector.shape_cast %17 : vector<3x256xf32> to vector<1x3x256xf32>
    tpu.vector_store %arg7[%c0_13, %c0_14, %c0_15], %20 {strides = array<i32>} : memref<1x3x256xf32, #tpu.memory_space<vmem>>, vector<1x3x256xf32>,
    return
  }
  func.func @transform_0(%arg0: i32, %arg1: i32) -> (i32, i32, i32) {
    %c0_i32 = arith.constant 0 : i32
    %c0_i32_0 = arith.constant 0 : i32
    return %arg0, %c0_i32, %arg1 : i32, i32, i32
  }
  func.func @transform_1(%arg0: i32, %arg1: i32) -> (i32, i32) {
    %c0_i32 = arith.constant 0 : i32
    %c0_i32_0 = arith.constant 0 : i32
    %c0_i32_1 = arith.constant 0 : i32
    return %c0_i32, %c0_i32_0 : i32, i32
  }
  func.func @transform_2(%arg0: i32, %arg1: i32) -> (i32, i32) {
    %c0_i32 = arith.constant 0 : i32
    %c0_i32_0 = arith.constant 0 : i32
    %c0_i32_1 = arith.constant 0 : i32
    return %c0_i32, %c0_i32_0 : i32, i32
  }
  func.func @transform_3(%arg0: i32, %arg1: i32) -> (i32, i32) {
    %c0_i32 = arith.constant 0 : i32
    %c0_i32_0 = arith.constant 0 : i32
    %c0_i32_1 = arith.constant 0 : i32
    return %c0_i32, %c0_i32_0 : i32, i32
  }
  func.func @transform_4(%arg0: i32, %arg1: i32) -> (i32, i32) {
    %c0_i32 = arith.constant 0 : i32
    %c0_i32_0 = arith.constant 0 : i32
    %c0_i32_1 = arith.constant 0 : i32
    return %c0_i32, %c0_i32_0 : i32, i32
  }
  func.func @transform_5(%arg0: i32, %arg1: i32) -> (i32, i32, i32) {
    %c0_i32 = arith.constant 0 : i32
    %c0_i32_0 = arith.constant 0 : i32
    return %arg0, %c0_i32, %arg1 : i32, i32, i32
  }
}

</mosaic_0001>

<bundles_post_ra>
// kernel: tpu_custom_call.1
= control target key start
LH: loop header
LB: loop body
LE: loop exit
PB: predicated region body
PF: predicated region fallthrough
CT: control target
= control target key end

     0   :  { %s720_s18 = smov 0   ;;  %s722_s19 = smov 0   ;;  %s806_s0 = inlined_call_operand.vmem [shape: f32[2,4,256], index: 0, kind: input, shape index: {}]   ;;  %s807_s1 = inlined_call_operand.vmem [shape: bf16[64,4], index: 1, kind: input, shape index: {}]   ;;  %s808_s2 = inlined_call_operand.vmem [shape: f32[64,1], index: 2, kind: input, shape index: {}]   ;;  %s809_s3 = inlined_call_operand.vmem [shape: bf16[3,64], index: 3, kind: input, shape index: {}]   ;;  %s810_s4 = inlined_call_operand.vmem [shape: f32[3,1], index: 4, kind: input, shape index: {}]   ;;  %s811_s5 = inlined_call_operand.vmem [shape: f32[2,3,256], index: 5, kind: output, shape index: {}]  }
   0x1   :  { %s724_s20 = smov 0  }
   0x2 LB: > { %s27_s21 = sadd.s32 1, %s683_s19  ;;  %p614_p0 = scmp.ge.s32.totalorder %s687_s20, 1  ;;  %s687_s20 = sphi %s724_s20, %s15_s20   ;;  %s683_s19 = sphi %s722_s19, %s813_s19   ;;  %s679_s18 = sphi %s720_s18, %s812_s18  }
   0x3   : > { %p29_p1 = scmp.ge.s32.totalorder %s27_s21, 2  ;;  %p208_p2 = scmp.lt.s32.totalorder %s687_s20, 3 }
   0x5   : > { %s815_s21 = smov (%p29_p1, %s27_s21), 0  ;;  %p209_p3 = pnand %p614_p0, %p208_p2 }
   0x6   : > { %p245_p4 = scmp.lt.s32.totalorder (!%p209_p3), %s679_s18, 1  ;;  %v689_v0 = vmov (!%p209_p3), 0   ;;  %v279_v1 = vld [vmem:[%s808_s2] sm:$0xff] (!%p209_p3)  ;;  %v281_v2 = vld [vmem:[%s808_s2 + $0x10] sm:$0xff] (!%p209_p3)  ;;  %vm360_vm0 = vcmask (!%p209_p3), 1041408   ;;  %v280_v4 = vld [vmem:[%s808_s2 + $0x8] sm:$0xff] (!%p209_p3) }
   0x7   : > { %212 = sbr.rel (%p209_p3) target bundleno = 495 (0x1ef), region = 40  ;;  %399 = vmatprep.mubr.bf16.mxu0 (!%p209_p3), %v689_v0  ;;  %658 = vset.pattern.permute.xlu0 (!%p209_p3), %v689_v0  ;;  %v282_v7 = vld [vmem:[%s808_s2 + $0x18] sm:$0xff] (!%p209_p3)  ;;  %v283_v10 = vld [vmem:[%s808_s2 + $0x20] sm:$0xff] (!%p209_p3)  ;;  %v284_v12 = vld [vmem:[%s808_s2 + $0x28] sm:$0xff] (!%p209_p3)  ;;  %vm347_vm1 = vcmask (!%p209_p3), 31744   ;;  %vm471_vm2 = vcmask (!%p209_p3), 523264  }
   0x8   : > { %659 = vset.pattern.permute.xlu1 (!%p209_p3), %v689_v0  ;;  %507 = vmatprep.mubr.bf16.mxu1 (!%p209_p3), %v689_v0  ;;  %v661_v11 = vld [vmem:[%s807_s1] sm:$0xff] (!%p209_p3)   ;;  %v285_v13 = vld [vmem:[%s808_s2 + $0x30] sm:$0xff] (!%p209_p3)  ;;  %v286_v14 = vld [vmem:[%s808_s2 + $0x38] sm:$0xff] (!%p209_p3) }
   0x9   : > { %289 = vperm.xlu0 (!%p209_p3), %658, %v279_v1   ;;  %299 = vperm.xlu1 (!%p209_p3), %659, %v281_v2   ;;  %v465_v15 = vld [vmem:[%s810_s4] sm:$0x7] (!%p209_p3)  ;;  %v662_v16 = vld [vmem:[%s807_s1 + $0x8] sm:$0xff] (!%p209_p3)   ;;  %v663_v17 = vld [vmem:[%s807_s1 + $0x10] sm:$0xff] (!%p209_p3)  }
   0xa   : > { %v664_v18 = vld [vmem:[%s807_s1 + $0x18] sm:$0xff] (!%p209_p3)  }
   0xd   : > { %294 = vperm.xlu0 (!%p209_p3), %658, %v280_v4   ;;  %304 = vperm.xlu1 (!%p209_p3), %659, %v282_v7  }
   0xe   : > { %s817_s18 = smov (!%p245_p4, %s679_s18), 1 }
   0xf   : > { %s631_s22 = sshll.u32 %s817_s18, 3 }
  0x10   : > { %s252_s27 = scalar_lea.vmem %s806_s0, %s631_s22  ;;  %s262_s11 = scalar_lea.vmem %s811_s5, %s631_s22 }
  0x11   : > { %v265_v3 = vld [vmem:[%s252_s27] sm:$0xff]  ;;  %309 = vperm.xlu0 %658, %v283_v10   ;;  %314 = vperm.xlu1 %659, %v284_v12  }
  0x12   : > { %v267_v5 = vcombine.high %v265_v3, %v265_v3  ;;  %v269_v6 = vpack.c.bf16 %v265_v3, %v265_v3 }
  0x14   : > { %v270_v8 = vpack.c.bf16 %v267_v5, %v267_v5  ;;  %v362_v9 = vsel %vm360_vm0, %v269_v6, 0 }
  0x15   : > { %319 = vperm.xlu0 %658, %v285_v13   ;;  %324 = vperm.xlu1 %659, %v286_v14  }
  0x16   : > { %623 = vmatprep.subr.msk.bf16.mxu0 %vm360_vm0, %v270_v8 }
  0x17   : > { %368 = vmatpush1.bf16.msra.mxu0 %v362_v9 }
  0x19   : > { %468 = vperm.xlu0 %658, %v465_v15  }
  0x1a   : > { %624 = vmatmul.mubr.msk.bf16.vlgmr.msra.gmra.mrb[0].mxu0 %vm347_vm1, %v661_v11 }
  0x1b   : > { %409 = vmatprep.mubr.bf16.mxu0 %v689_v0 }
  0x22   : > { %625 = vmatmul.mubr.msk.bf16.gmra.mrb[4].mxu0 %vm347_vm1, %v662_v16 }
  0x23   : > { %419 = vmatprep.mubr.bf16.mxu0 %v689_v0 }
  0x2a   : > { %626 = vmatmul.mubr.msk.bf16.gmra.mrb[8].mxu0 %vm347_vm1, %v663_v17 }
  0x2b   : > { %429 = vmatprep.mubr.bf16.mxu0 %v689_v0 }
  0x32   : > { %627 = vmatmul.mubr.msk.bf16.gmra.mrb[12].mxu0 %vm347_vm1, %v664_v18 }
  0x88   : > { %v290_v19 = vpop.permute.xlu0 %289  ;;  %v300_v28 = vpop.permute.xlu1 %299 }
  0x8c   : > { %v295_v23 = vpop.permute.xlu0 %294  ;;  %v305_v39 = vpop.permute.xlu1 %304 }
  0x90   : > { %v310_v50 = vpop.permute.xlu0 %309  ;;  %v315_v55 = vpop.permute.xlu1 %314 }
  0x94   : > { %v320_v2 = vpop.permute.xlu0 %319  ;;  %v325_v7 = vpop.permute.xlu1 %324 }
  0xed   : > { %v401_v20 = vpop.f32.mrb[0].mxu0 }
  0xee   : > { %v402_v21 = vadd.f32 %v401_v20, %v290_v19  ;;  %v403_v22 = vpop.f32.mrb[1].mxu0  ;;  %v469_v20 = vpop.permute.xlu0 %468 }
  0xef   : > { %v404_v24 = vadd.f32 %v403_v22, %v290_v19  ;;  %v405_v25 = vpop.f32.mrb[2].mxu0  ;;  %v456_v19 = vld [vmem:[%s809_s3] sm:$0x3] }
  0xf0   : > { %v406_v26 = vadd.f32 %v405_v25, %v295_v23  ;;  %v407_v27 = vpop.f32.mrb[3].mxu0  ;;  %v440_v30 = vmax.f32 %v402_v21, 0.0 }
  0xf1   : > { %v408_v29 = vadd.f32 %v407_v27, %v295_v23  ;;  %v441_v32 = vmax.f32 %v404_v24, 0.0 }
  0xf2   : > { %v442_v31 = vmax.f32 %v406_v26, 0.0 }
  0xf3   : > { %v443_v33 = vmax.f32 %v408_v29, 0.0 }
  0xf4   : > { %v457_v34 = vpack.c.bf16 %v442_v31, %v440_v30 }
  0xf5   : > { %v411_v35 = vpop.f32.mrb[4].mxu0  ;;  %v458_v36 = vpack.c.bf16 %v443_v33, %v441_v32 }
  0xf6   : > { %v412_v37 = vadd.f32 %v411_v35, %v300_v28  ;;  %v413_v38 = vpop.f32.mrb[5].mxu0 }
  0xf7   : > { %v414_v40 = vadd.f32 %v413_v38, %v300_v28  ;;  %v415_v41 = vpop.f32.mrb[6].mxu0  ;;  %475 = vmatprep.subr.bf16.mxu1 %v458_v36 }
  0xf8   : > { %v416_v42 = vadd.f32 %v415_v41, %v305_v39  ;;  %v417_v43 = vpop.f32.mrb[7].mxu0  ;;  %476 = vmatpush1.bf16.msra.mxu1 %v457_v34  ;;  %v444_v45 = vmax.f32 %v412_v37, 0.0 }
  0xf9   : > { %v418_v44 = vadd.f32 %v417_v43, %v305_v39  ;;  %v445_v47 = vmax.f32 %v414_v40, 0.0 }
  0xfa   : > { %v446_v46 = vmax.f32 %v416_v42, 0.0 }
  0xfb   : > { %v447_v48 = vmax.f32 %v418_v44, 0.0 }
  0xfc   : > { %v459_v49 = vpack.c.bf16 %v446_v46, %v444_v45 }
  0xfd   : > { %v460_v51 = vpack.c.bf16 %v447_v48, %v445_v47  ;;  %v421_v52 = vpop.f32.mrb[8].mxu0 }
  0xfe   : > { %v422_v53 = vadd.f32 %v421_v52, %v310_v50  ;;  %v423_v54 = vpop.f32.mrb[9].mxu0 }
  0xff   : > { %v424_v56 = vadd.f32 %v423_v54, %v310_v50  ;;  %v425_v57 = vpop.f32.mrb[10].mxu0  ;;  %477 = vmatprep.subr.bf16.mxu1 %v460_v51 }
 0x100   : > { %v426_v58 = vadd.f32 %v425_v57, %v315_v55  ;;  %v427_v59 = vpop.f32.mrb[11].mxu0  ;;  %478 = vmatpush1.bf16.msra.mxu1 %v459_v49  ;;  %v448_v61 = vmax.f32 %v422_v53, 0.0 }
 0x101   : > { %v428_v60 = vadd.f32 %v427_v59, %v315_v55  ;;  %v449_v63 = vmax.f32 %v424_v56, 0.0 }
 0x102   : > { %v450_v62 = vmax.f32 %v426_v58, 0.0 }
 0x103   : > { %v451_v0 = vmax.f32 %v428_v60, 0.0 }
 0x104   : > { %v461_v1 = vpack.c.bf16 %v450_v62, %v448_v61 }
 0x105   : > { %v462_v3 = vpack.c.bf16 %v451_v0, %v449_v63  ;;  %v431_v4 = vpop.f32.mrb[12].mxu0 }
 0x106   : > { %v432_v5 = vadd.f32 %v431_v4, %v320_v2  ;;  %v433_v6 = vpop.f32.mrb[13].mxu0 }
 0x107   : > { %v434_v8 = vadd.f32 %v433_v6, %v320_v2  ;;  %v435_v9 = vpop.f32.mrb[14].mxu0  ;;  %479 = vmatprep.subr.bf16.mxu1 %v462_v3 }
 0x108   : > { %v436_v10 = vadd.f32 %v435_v9, %v325_v7  ;;  %v437_v11 = vpop.f32.mrb[15].mxu0  ;;  %480 = vmatpush1.bf16.msra.mxu1 %v461_v1  ;;  %v452_v13 = vmax.f32 %v432_v5, 0.0 }
 0x109   : > { %v438_v12 = vadd.f32 %v437_v11, %v325_v7  ;;  %v453_v15 = vmax.f32 %v434_v8, 0.0 }
 0x10a   : > { %v454_v14 = vmax.f32 %v436_v10, 0.0 }
 0x10b   : > { %v455_v16 = vmax.f32 %v438_v12, 0.0 }
 0x10c   : > { %v463_v17 = vpack.c.bf16 %v454_v14, %v452_v13 }
 0x10d   : > { %v464_v18 = vpack.c.bf16 %v455_v16, %v453_v15 }
 0x10f   : > { %481 = vmatprep.subr.bf16.mxu1 %v464_v18 }
 0x110   : > { %482 = vmatpush1.bf16.msra.mxu1 %v463_v17 }
 0x113   : > { %628 = vmatmul.mubr.msk.bf16.vlgmr.msra.gmra.mrb[0].mxu1 %vm471_vm2, %v456_v19 }
 0x1e6   : > { %v509_v21 = vpop.f32.mrb[0].mxu1 }
 0x1e7   : > { %v510_v22 = vadd.f32 %v509_v21, %v469_v20  ;;  %v511_v23 = vpop.f32.mrb[1].mxu1 }
 0x1e8   : > { %v512_v24 = vadd.f32 %v511_v23, %v469_v20  ;;  %v513_v25 = vpop.f32.mrb[2].mxu1 }
 0x1e9   : > { %v516_v26 = vmax.f32 %v510_v22, 0.0  ;;  %v514_v27 = vpop.f32.mrb[3].mxu1 }
 0x1ea   : > { %v517_v28 = vmax.f32 %v512_v24, 0.0 }
 0x1ec   : > { %v520_v29 = vcombine.low %v516_v26, %v517_v28 }
 0x1ee   : > { %522 = vst [vmem:[%s262_s11] sm:$0x77] %v520_v29 }
 0x1ef PF: > { %s15_s20 = sadd.s32 1, %s687_s20   ;;  %s812_s18 = smov %s683_s19 }
 0x1f0   : > { %p12_p5 = scmp.ge.s32.totalorder %s15_s20, 4   ;;  %s813_s19 = smov %s815_s21 }
 0x1f2   :  { %14 = sbr.rel (!%p12_p5) target bundleno = 2 (0x2), region = 70 }

</bundles_post_ra>
